<compile_context>
chip_gen: v6e
topology: v6e:2x2x1
jax: 0.10.0
libtpu: 0.0.40
codegen_flags: <defaults>
</compile_context>

<pallas_src>
import jax
import jax.numpy as jnp
from jax.experimental import pallas as pl
from jax.experimental.pallas import tpu as pltpu


def _identity_kernel(x_ref, o_ref):
    # Straight VMEM copy of the current tile (pure DMA-bound op).
    o_ref[...] = x_ref[...]


def _tile_budget_bytes() -> int:
    """Per-tile byte budget, chosen so 4x buffering (in+out, double-buffered)
    fits the default scoped VMEM of the local chip without flags."""
    try:
        kind = jax.devices()[0].device_kind.lower()
    except Exception:  # pragma: no cover - defensive
        kind = ""
    if "v6" in kind or "v7" in kind:
        return 6 * 1024 * 1024  # 4x -> 24 MiB, within 32 MiB default scoped VMEM
    return 2 * 1024 * 1024      # v5e & unknown: 4x -> 8 MiB, within 16 MiB


def _lane_dense_2d(x: jax.Array) -> jax.Array:
    """Collapse trailing dims of a contiguous array so the last dim is >= 128.

    Any contiguous reshape is legal for an identity copy; making the lane dim
    >= 128 (ideally a multiple of 128) avoids masked partial stores.
    """
    total = x.size
    n = 1
    for d in reversed(x.shape):
        n *= d
        if n >= 128:
            break
    if n < 128:                 # whole array smaller than one vreg row
        return x.reshape(1, total)
    return x.reshape(total // n, n)


def _choose_tiles(M: int, N: int, itemsize: int, budget: int):
    """Pick (tm, tn) block sizes.

    Rules:
      * last-dim tile is either the full dim (always legal) or a multiple of 128;
      * second-to-last tile is either the full dim or a multiple of the dtype's
        sublane packing (8 for 32-bit, 16 for 16-bit, 32 for 8-bit);
      * tile bytes capped by `budget` so in+out double buffering fits the
        default scoped VMEM of the chip;
      * avoid a single-block grid so 'parallel' axes shard across both
        TensorCores on v7x.
    """
    sublane = {4: 8, 2: 16, 1: 32}.get(itemsize, 8)
    lane_cap = 8192  # max lane-tile width (elements)

    if N <= lane_cap and sublane * N * itemsize <= budget:
        tn = N  # full last dim: lane-dense and legal for any N
    else:
        tn = min(lane_cap, budget // (sublane * itemsize))
        tn = max(128, (tn // 128) * 128)  # must be a multiple of 128

    tm = budget // max(1, tn * itemsize)
    tm = max(sublane, (tm // sublane) * sublane)  # multiple of sublane pack
    if M <= tm:
        tm = M  # full dim: legal for any M

    # Megacore: if everything fits one block, split rows so the grid has >= 2
    # 'parallel' steps (keeps both v7x TensorCores busy). Partial edge blocks
    # are handled by the cdiv grid.
    if pl.cdiv(M, tm) * pl.cdiv(N, tn) == 1 and M > sublane:
        half = sublane * pl.cdiv(pl.cdiv(M, 2), sublane)
        if sublane <= half < M:
            tm = half
    return tm, tn


def identity(x: jax.Array, materialize: bool = False) -> jax.Array:
    """nn.Identity forward.

    By default returns `x` unchanged (zero HBM traffic). When
    `materialize=True`, produces a fresh array equal to `x` via a Pallas
    TPU copy kernel (DMA-bound, near HBM roofline).
    """
    if not materialize:
        return x
    if x.size == 0:
        return x

    orig_shape = x.shape
    dtype = x.dtype
    itemsize = jnp.dtype(dtype).itemsize

    # Lane-dense 2D view; metadata-only for a contiguous input.
    x2d = _lane_dense_2d(x)
    M, N = x2d.shape

    budget = _tile_budget_bytes()
    tm, tn = _choose_tiles(M, N, itemsize, budget)
    grid = (pl.cdiv(M, tm), pl.cdiv(N, tn))

    out2d = pl.pallas_call(
        _identity_kernel,
        out_shape=jax.ShapeDtypeStruct((M, N), dtype),
        grid_spec=pltpu.PrefetchScalarGridSpec(
            num_scalar_prefetch=0,
            grid=grid,
            in_specs=[pl.BlockSpec((tm, tn), lambda i, j: (i, j))],
            out_specs=pl.BlockSpec((tm, tn), lambda i, j: (i, j)),
        ),
        compiler_params=pltpu.CompilerParams(
            dimension_semantics=("parallel", "parallel"),
            # Explicit scoped-VMEM limit only when using the larger tiles
            # (v6e/v7x); default limits already cover the 2 MiB budget.
            vmem_limit_bytes=(32 * 1024 * 1024 if budget > 2 * 1024 * 1024 else None),
        ),
        # Pure memory traffic: read + write of the whole array, zero flops.
        cost_estimate=pl.CostEstimate(
            flops=0,
            transcendentals=0,
            bytes_accessed=2 * M * N * itemsize,
        ),
    )(x2d)

    return out2d.reshape(orig_shape)


if __name__ == "__main__":
    key = jax.random.PRNGKey(0)

    # Small NCHW-like input consistent with forward(x) -> x.
    x = jax.random.normal(key, (2, 4, 16, 16), dtype=jnp.float32)

    # True-Identity fast path: no kernel, no traffic.
    y_fast = identity(x)
    assert y_fast is x

    # Materialized Pallas copy: lane-dense view is (8, 256).
    y = identity(x, materialize=True)
    jax.block_until_ready(y)
    assert y.shape == x.shape and y.dtype == x.dtype
    assert bool(jnp.all(y == x))

    # Ragged f32 input (rows/cols not tile multiples) -> partial edge blocks.
    x2 = jax.random.normal(jax.random.PRNGKey(1), (257, 300), dtype=jnp.float32)
    y2 = identity(x2, materialize=True)
    jax.block_until_ready(y2)
    assert y2.shape == x2.shape and y2.dtype == x2.dtype
    assert bool(jnp.all(y2 == x2))

    # bf16 input -> exercises 16-row sublane granularity and full-dim lane tile.
    x3 = jax.random.normal(jax.random.PRNGKey(2), (3, 37, 130)).astype(jnp.bfloat16)
    y3 = identity(x3, materialize=True)
    jax.block_until_ready(y3)
    assert y3.shape == x3.shape and y3.dtype == x3.dtype
    assert bool(jnp.all(y3 == x3))

    print("KERNEL_OK")
</pallas_src>

<mosaic_0001>
module attributes {stable_mosaic.version = 11 : i64} {
  func.func @_identity_kernel(%arg0: i32, %arg1: i32, %arg2: memref<8x256xf32, #tpu.memory_space<vmem>>, %arg3: memref<8x256xf32, #tpu.memory_space<vmem>>) attributes {dimension_semantics = [#tpu.dimension_semantics<parallel>, #tpu.dimension_semantics<parallel>], iteration_bounds = array<i64: 1, 1>, scalar_prefetch = 0 : i64, scratch_operands = 0 : i64, tpu.core_type = #tpu.core_type<tc>, window_params = [{transform_indices = @transform_0, window_bounds = array<i64: 8, 256>}, {transform_indices = @transform_1, window_bounds = array<i64: 8, 256>}]} {
    %c0 = arith.constant 0 : index
    %c0_0 = arith.constant 0 : index
    %0 = vector.load %arg2[%c0, %c0_0] : memref<8x256xf32, #tpu.memory_space<vmem>>, vector<8x256xf32>
    %c0_1 = arith.constant 0 : index
    %c0_2 = arith.constant 0 : index
    %1 = vector.load %arg3[%c0_1, %c0_2] : memref<8x256xf32, #tpu.memory_space<vmem>>, vector<8x256xf32>
    tpu.vector_store %arg3[%c0_1, %c0_2], %0 {strides = array<i32>} : memref<8x256xf32, #tpu.memory_space<vmem>>, vector<8x256xf32>,
    return
  }
  func.func @transform_0(%arg0: i32, %arg1: i32) -> (i32, i32) {
    %c0_i32 = arith.constant 0 : i32
    return %arg0, %arg1 : i32, i32
  }
  func.func @transform_1(%arg0: i32, %arg1: i32) -> (i32, i32) {
    %c0_i32 = arith.constant 0 : i32
    return %arg0, %arg1 : i32, i32
  }
}

</mosaic_0001>

<bundles_post_ra>
// kernel: tpu_custom_call.1
= control target key start
LH: loop header
LB: loop body
LE: loop exit
PB: predicated region body
PF: predicated region fallthrough
CT: control target
= control target key end

     0   :  { %6 = vsyncpa [#allocation3], 0  ;;  %s104_s0 = inlined_call_operand.hbm [shape: f32[8,256], index: 0, kind: input, shape index: {}]   ;;  %s105_s1 = inlined_call_operand.hbm [shape: f32[8,256], index: 1, kind: output, shape index: {}]  }
   0x1   :  { %7 = vsyncpa [#allocation4], 0  ;;  %s86_s6 = smov [#allocation2]  }
   0x2   :  { %s14_s7 = sshll.u32 %s86_s6, 4  ;;  %s15_s7 = int_to_ptr.vmem [resolvable:$true] %s14_s7 }
   0x3   :  { %s50_s8 = scalar_lea.vmem %s15_s7, 256  ;;  %p55_p1 = scmp.lt.s32.totalorder %s15_s7, %s15_s7 }
   0x4   :  { %p51_p0 = scmp.ne.s32.totalorder %s15_s7, %s50_s8  ;;  %p56_p2 = scmp.lt.s32.totalorder %s50_s8, %s50_s8 }
   0x6   :  { %p57_p3 = por %p56_p2, %p55_p1 }
   0x8   :  { %p58_p4 = pnand %p57_p3, %p51_p0 }
   0xa   :  { %61 = shalt.err (!%p58_p4)
}
   0xb   :  { %17 = dma.hbm_to_vmem [thread:$0]  %s104_s0, 256, %s15_s7, [#allocation3]  }
   0xc   :  { %82 = dma.done.wait [#allocation3], 256  }
   0xd   :  { %83 = vsyncadd [#allocation3], 4294967040  ;;  %s87_s11 = smov [#allocation5]   ;;  %v21_v0 = vld [vmem:[#allocation2] sm:$0xff]  ;;  %v22_v1 = vld [vmem:[#allocation2 + $0x8] sm:$0xff] }
   0xe   :  { %s31_s12 = sshll.u32 %s87_s11, 4  ;;  %23 = vst [vmem:[#allocation5] sm:$0xff] %v21_v0  ;;  %24 = vst [vmem:[#allocation5 + $0x8] sm:$0xff] %v22_v1  ;;  %s32_s12 = int_to_ptr.vmem [resolvable:$true] %s31_s12 }
   0xf   :  { %s62_s13 = scalar_lea.vmem %s32_s12, 256  ;;  %p67_p6 = scmp.lt.s32.totalorder %s32_s12, %s32_s12 }
  0x10   :  { %p63_p5 = scmp.ne.s32.totalorder %s32_s12, %s62_s13  ;;  %p68_p7 = scmp.lt.s32.totalorder %s62_s13, %s62_s13 }
  0x12   :  { %p69_p8 = por %p68_p7, %p67_p6 }
  0x14   :  { %p70_p9 = pnand %p69_p8, %p63_p5 }
  0x16   :  { %73 = shalt.err (!%p70_p9)
}
  0x17   :  { %34 = dma.vmem_to_hbm [thread:$0]  %s32_s12, 256, %s105_s1, [#allocation4]  }
  0x18   :  { %84 = dma.done.wait [#allocation4], 256  }
  0x19   :  { %85 = vsyncadd [#allocation4], 4294967040 }
  0x1a   :  { %38 = vsyncpa [#allocation3], 1 }
  0x1b   :  { %39 = vsyncpa [#allocation4], 1 }

</bundles_post_ra>
